<compile_context>
chip_gen: v7x
topology: tpu7x:2x2x1
jax: 0.10.0
libtpu: 0.0.40
codegen_flags: <defaults>
</compile_context>

<pallas_src>
import jax
import jax.numpy as jnp
from jax.experimental import pallas as pl
from jax.experimental.pallas import tpu as pltpu


def _round_up(x, m):
    return ((x + m - 1) // m) * m


def mlp_kernel(xt_ref, w1t_ref, b1_ref, w2t_ref, b2_ref, w3_ref, b3_ref, o_ref):
    # All tensors are "transposed": features/hidden on sublanes, batch on lanes.
    xt = xt_ref[...]                      # (K, bm) f32
    w1t = w1t_ref[...]                    # (H1, K) f32
    b1 = b1_ref[...]                      # (H1, 1)
    b2 = b2_ref[...]                      # (H2, 1)
    b3 = b3_ref[...]                      # (1, 1)

    # ---- Layer 1: Linear + Tanh ----
    # K == in_features is tiny (4): an MXU matmul would be >95% padding in K,
    # so do K broadcast multiply-adds on the VPU (unrolled at trace time).
    acc = jnp.zeros((w1t.shape[0], xt.shape[1]), jnp.float32)     # (H1, bm)
    for k in range(w1t.shape[1]):
        acc = acc + w1t[:, k:k + 1] * xt[k:k + 1, :]
    h1t = jnp.tanh(acc + b1)                                       # (H1, bm)

    # ---- Layer 2: Linear + Tanh (MXU, N = bm is lane-dense) ----
    h2t = jnp.dot(w2t_ref[...], h1t, preferred_element_type=jnp.float32)
    h2t = jnp.tanh(h2t + b2)                                       # (H2, bm)

    # ---- Output layer: Linear + Sigmoid ----
    # out_dim == 1: elementwise mul + sublane reduction instead of an M=1 MXU push.
    # TODO(synk): for output_size > 1 this should fall back to jnp.dot(w3^T, h2t).
    z = jnp.sum(w3_ref[...] * h2t, axis=0, keepdims=True) + b3     # (1, bm)
    o_ref[...] = jax.nn.sigmoid(z)                                  # dense (1, bm) store


def flexible_nn_forward(x, params, *, max_block_batch=8192, activation="tanh"):
    """Fused MLP forward pass (batch-in-lanes), returns [batch, output_size] f32.

    x: [batch, input_size] float32
    params: dict of w1,b1,w2,b2,w3,b3 (weights stored [in,out], biases [1,out])
    """
    if activation != "tanh":
        raise NotImplementedError("kernel is specialized to activation='tanh'")
    # TODO(synk): FlexibleNN supports arbitrary depth/activation; this kernel is
    # generated for exactly two tanh hidden layers (w1,w2,w3).

    batch, in_dim = x.shape
    out_dim = params["w3"].shape[1]
    if out_dim != 1:
        raise NotImplementedError("kernel output path is specialized to output_size=1")

    # Layout plumbing (tiny, in_dim=4 / H=32): transpose params once.
    w1t = params["w1"].T.astype(jnp.float32)          # (H1, K)
    b1t = params["b1"].reshape(-1, 1).astype(jnp.float32)   # (H1, 1)
    w2t = params["w2"].T.astype(jnp.float32)          # (H2, H1)
    b2t = params["b2"].reshape(-1, 1).astype(jnp.float32)   # (H2, 1)
    w3 = params["w3"].astype(jnp.float32)             # (H2, 1)
    b3t = params["b3"].reshape(-1, 1).astype(jnp.float32)   # (1, 1)

    # Batch goes to the lane dimension: pad to a multiple of 128 lanes.
    LANE = 128
    padded_batch = _round_up(batch, LANE)
    bm = min(padded_batch, _round_up(max_block_batch, LANE))
    padded_batch = _round_up(padded_batch, bm)        # whole number of tiles
    grid = (padded_batch // bm,)                      # == (1,) for typical batches

    # x stays f32 (no extra HBM cast pass); transpose + pad is 4 x padded_batch floats.
    xt = jnp.pad(x.astype(jnp.float32).T, ((0, 0), (0, padded_batch - batch)))

    const2d = lambda i: (0, 0)  # weights/biases: same block every step -> VMEM-resident

    out_t = pl.pallas_call(
        mlp_kernel,
        out_shape=jax.ShapeDtypeStruct((out_dim, padded_batch), jnp.float32),
        grid=grid,
        in_specs=[
            pl.BlockSpec((in_dim, bm), lambda i: (0, i)),   # streamed batch tile (lanes)
            pl.BlockSpec(w1t.shape, const2d),
            pl.BlockSpec(b1t.shape, const2d),
            pl.BlockSpec(w2t.shape, const2d),
            pl.BlockSpec(b2t.shape, const2d),
            pl.BlockSpec(w3.shape, const2d),
            pl.BlockSpec(b3t.shape, const2d),
        ],
        out_specs=pl.BlockSpec((out_dim, bm), lambda i: (0, i)),
        compiler_params=pltpu.CompilerParams(
            # Single-step grid for small/medium batches; splitting a KB-scale
            # workload across v7x's two TCs is a net loss at this size.
            dimension_semantics=("arbitrary",),
        ),
    )(xt, w1t, b1t, w2t, b2t, w3, b3t)

    return out_t[:, :batch].T                          # (batch, out_dim)


def init_params(key, input_size, hidden_sizes, output_size):
    """Deterministic init mimicking nn.Linear's U(-1/sqrt(fan_in), 1/sqrt(fan_in))."""
    sizes = [input_size] + list(hidden_sizes) + [output_size]
    params = {}
    names = ["1", "2", "3"]
    for i, (fan_in, fan_out) in enumerate(zip(sizes[:-1], sizes[1:])):
        key, kw, kb = jax.random.split(key, 3)
        bound = 1.0 / jnp.sqrt(jnp.float32(fan_in))
        params[f"w{names[i]}"] = jax.random.uniform(
            kw, (fan_in, fan_out), jnp.float32, -bound, bound
        )
        params[f"b{names[i]}"] = jax.random.uniform(
            kb, (1, fan_out), jnp.float32, -bound, bound
        )
    return params


def reference_forward(x, params):
    """Pure-JAX f32 reference matching the PyTorch module's forward."""
    h = jnp.tanh(x @ params["w1"] + params["b1"])
    h = jnp.tanh(h @ params["w2"] + params["b2"])
    z = h @ params["w3"] + params["b3"]
    return jax.nn.sigmoid(z)


if __name__ == "__main__":
    # bank-note dataset has 4 features; output_size = 1 (binary label prob).
    input_size = 4
    hidden_sizes = [32, 32]
    output_size = 1
    batch = 200          # not a lane multiple -> exercises padding of the lane dim
    activation = "tanh"  # kernel hard-codes tanh for the hidden layers

    key = jax.random.PRNGKey(0)
    key, kx = jax.random.split(key)
    x = jax.random.normal(kx, (batch, input_size), jnp.float32)
    params = init_params(key, input_size, hidden_sizes, output_size)

    out = flexible_nn_forward(x, params, activation=activation)
    out = jax.block_until_ready(out)

    ref = reference_forward(x, params)
    assert out.shape == (batch, output_size)
    assert jnp.allclose(out, ref, atol=2e-3, rtol=2e-3), float(jnp.max(jnp.abs(out - ref)))

    print("KERNEL_OK")
</pallas_src>

<mosaic_0001>
module attributes {stable_mosaic.version = 11 : i64} {
  func.func @mlp_kernel(%arg0: i32, %arg1: memref<4x256xf32, #tpu.memory_space<vmem>>, %arg2: memref<32x4xf32, #tpu.memory_space<vmem>>, %arg3: memref<32x1xf32, #tpu.memory_space<vmem>>, %arg4: memref<32x32xf32, #tpu.memory_space<vmem>>, %arg5: memref<32x1xf32, #tpu.memory_space<vmem>>, %arg6: memref<32x1xf32, #tpu.memory_space<vmem>>, %arg7: memref<1x1xf32, #tpu.memory_space<vmem>>, %arg8: memref<1x256xf32, #tpu.memory_space<vmem>>) attributes {dimension_semantics = [#tpu.dimension_semantics<arbitrary>], iteration_bounds = array<i64: 1>, scalar_prefetch = 0 : i64, scratch_operands = 0 : i64, tpu.core_type = #tpu.core_type<tc>, window_params = [{transform_indices = @transform_0, window_bounds = array<i64: 4, 256>}, {pipeline_mode = #tpu.pipeline_mode<synchronous>, transform_indices = @transform_1, window_bounds = array<i64: 32, 4>}, {pipeline_mode = #tpu.pipeline_mode<synchronous>, transform_indices = @transform_2, window_bounds = array<i64: 32, 1>}, {pipeline_mode = #tpu.pipeline_mode<synchronous>, transform_indices = @transform_3, window_bounds = array<i64: 32, 32>}, {pipeline_mode = #tpu.pipeline_mode<synchronous>, transform_indices = @transform_4, window_bounds = array<i64: 32, 1>}, {pipeline_mode = #tpu.pipeline_mode<synchronous>, transform_indices = @transform_5, window_bounds = array<i64: 32, 1>}, {pipeline_mode = #tpu.pipeline_mode<synchronous>, transform_indices = @transform_6, window_bounds = array<i64: 1, 1>}, {transform_indices = @transform_7, window_bounds = array<i64: 1, 256>}]} {
    %c0 = arith.constant 0 : index
    %c0_0 = arith.constant 0 : index
    %0 = vector.load %arg1[%c0, %c0_0] : memref<4x256xf32, #tpu.memory_space<vmem>>, vector<4x256xf32>
    %c0_1 = arith.constant 0 : index
    %c0_2 = arith.constant 0 : index
    %1 = vector.load %arg2[%c0_1, %c0_2] : memref<32x4xf32, #tpu.memory_space<vmem>>, vector<32x4xf32>
    %c0_3 = arith.constant 0 : index
    %c0_4 = arith.constant 0 : index
    %2 = vector.load %arg3[%c0_3, %c0_4] : memref<32x1xf32, #tpu.memory_space<vmem>>, vector<32x1xf32>
    %c0_5 = arith.constant 0 : index
    %c0_6 = arith.constant 0 : index
    %3 = vector.load %arg5[%c0_5, %c0_6] : memref<32x1xf32, #tpu.memory_space<vmem>>, vector<32x1xf32>
    %c0_7 = arith.constant 0 : index
    %c0_8 = arith.constant 0 : index
    %4 = vector.load %arg7[%c0_7, %c0_8] : memref<1x1xf32, #tpu.memory_space<vmem>>, vector<1x1xf32>
    %cst = arith.constant 0.000000e+00 : f32
    %5 = vector.broadcast %cst : f32 to vector<32x256xf32>
    %6 = vector.extract_strided_slice %1 {offsets = [0, 0], sizes = [32, 1], strides = [1, 1]} : vector<32x4xf32> to vector<32x1xf32>
    %7 = vector.extract_strided_slice %0 {offsets = [0, 0], sizes = [1, 256], strides = [1, 1]} : vector<4x256xf32> to vector<1x256xf32>
    %8 = vector.broadcast %6 : vector<32x1xf32> to vector<32x256xf32>
    %9 = vector.broadcast %7 : vector<1x256xf32> to vector<32x256xf32>
    %10 = arith.mulf %8, %9 : vector<32x256xf32>
    %11 = arith.addf %5, %10 : vector<32x256xf32>
    %12 = vector.extract_strided_slice %1 {offsets = [0, 1], sizes = [32, 1], strides = [1, 1]} : vector<32x4xf32> to vector<32x1xf32>
    %13 = vector.extract_strided_slice %0 {offsets = [1, 0], sizes = [1, 256], strides = [1, 1]} : vector<4x256xf32> to vector<1x256xf32>
    %14 = vector.broadcast %12 : vector<32x1xf32> to vector<32x256xf32>
    %15 = vector.broadcast %13 : vector<1x256xf32> to vector<32x256xf32>
    %16 = arith.mulf %14, %15 : vector<32x256xf32>
    %17 = arith.addf %11, %16 : vector<32x256xf32>
    %18 = vector.extract_strided_slice %1 {offsets = [0, 2], sizes = [32, 1], strides = [1, 1]} : vector<32x4xf32> to vector<32x1xf32>
    %19 = vector.extract_strided_slice %0 {offsets = [2, 0], sizes = [1, 256], strides = [1, 1]} : vector<4x256xf32> to vector<1x256xf32>
    %20 = vector.broadcast %18 : vector<32x1xf32> to vector<32x256xf32>
    %21 = vector.broadcast %19 : vector<1x256xf32> to vector<32x256xf32>
    %22 = arith.mulf %20, %21 : vector<32x256xf32>
    %23 = arith.addf %17, %22 : vector<32x256xf32>
    %24 = vector.extract_strided_slice %1 {offsets = [0, 3], sizes = [32, 1], strides = [1, 1]} : vector<32x4xf32> to vector<32x1xf32>
    %25 = vector.extract_strided_slice %0 {offsets = [3, 0], sizes = [1, 256], strides = [1, 1]} : vector<4x256xf32> to vector<1x256xf32>
    %26 = vector.broadcast %24 : vector<32x1xf32> to vector<32x256xf32>
    %27 = vector.broadcast %25 : vector<1x256xf32> to vector<32x256xf32>
    %28 = arith.mulf %26, %27 : vector<32x256xf32>
    %29 = arith.addf %23, %28 : vector<32x256xf32>
    %30 = vector.broadcast %2 : vector<32x1xf32> to vector<32x256xf32>
    %31 = arith.addf %29, %30 : vector<32x256xf32>
    %32 = math.tanh %31 : vector<32x256xf32>
    %c0_9 = arith.constant 0 : index
    %c0_10 = arith.constant 0 : index
    %33 = vector.load %arg4[%c0_9, %c0_10] : memref<32x32xf32, #tpu.memory_space<vmem>>, vector<32x32xf32>
    %cst_11 = arith.constant dense<0.000000e+00> : vector<32x256xf32>
    %34 = tpu.matmul %33, %32, %cst_11 {dimension_numbers = #tpu.dot_dimension_numbers<[1], [0], [0], [1], [0, 0, 1, 1], [], []>} : vector<32x32xf32>, vector<32x256xf32>, vector<32x256xf32> -> vector<32x256xf32>
    %35 = vector.broadcast %3 : vector<32x1xf32> to vector<32x256xf32>
    %36 = arith.addf %34, %35 : vector<32x256xf32>
    %37 = math.tanh %36 : vector<32x256xf32>
    %c0_12 = arith.constant 0 : index
    %c0_13 = arith.constant 0 : index
    %38 = vector.load %arg6[%c0_12, %c0_13] : memref<32x1xf32, #tpu.memory_space<vmem>>, vector<32x1xf32>
    %39 = vector.broadcast %38 : vector<32x1xf32> to vector<32x256xf32>
    %40 = arith.mulf %39, %37 : vector<32x256xf32>
    %cst_14 = arith.constant dense<0.000000e+00> : vector<256xf32>
    %41 = vector.multi_reduction <add>, %40, %cst_14 [0] : vector<32x256xf32> to vector<256xf32>
    %42 = vector.shape_cast %41 : vector<256xf32> to vector<1x256xf32>
    %43 = vector.broadcast %4 : vector<1x1xf32> to vector<1x256xf32>
    %44 = arith.addf %42, %43 : vector<1x256xf32>
    %45 = arith.negf %44 : vector<1x256xf32>
    %46 = math.exp %45 : vector<1x256xf32>
    %cst_15 = arith.constant 1.000000e+00 : f32
    %47 = vector.broadcast %cst_15 : f32 to vector<1x256xf32>
    %48 = arith.addf %47, %46 : vector<1x256xf32>
    %49 = arith.divf %47, %48 : vector<1x256xf32>
    %c0_16 = arith.constant 0 : index
    %c0_17 = arith.constant 0 : index
    %50 = vector.load %arg8[%c0_16, %c0_17] : memref<1x256xf32, #tpu.memory_space<vmem>>, vector<1x256xf32>
    tpu.vector_store %arg8[%c0_16, %c0_17], %49 {strides = array<i32>} : memref<1x256xf32, #tpu.memory_space<vmem>>, vector<1x256xf32>,
    return
  }
  func.func @transform_0(%arg0: i32) -> (i32, i32) {
    %c0_i32 = arith.constant 0 : i32
    %c0_i32_0 = arith.constant 0 : i32
    return %c0_i32, %arg0 : i32, i32
  }
  func.func @transform_1(%arg0: i32) -> (i32, i32) {
    %c0_i32 = arith.constant 0 : i32
    %c0_i32_0 = arith.constant 0 : i32
    %c0_i32_1 = arith.constant 0 : i32
    return %c0_i32, %c0_i32_0 : i32, i32
  }
  func.func @transform_2(%arg0: i32) -> (i32, i32) {
    %c0_i32 = arith.constant 0 : i32
    %c0_i32_0 = arith.constant 0 : i32
    %c0_i32_1 = arith.constant 0 : i32
    return %c0_i32, %c0_i32_0 : i32, i32
  }
  func.func @transform_3(%arg0: i32) -> (i32, i32) {
    %c0_i32 = arith.constant 0 : i32
    %c0_i32_0 = arith.constant 0 : i32
    %c0_i32_1 = arith.constant 0 : i32
    return %c0_i32, %c0_i32_0 : i32, i32
  }
  func.func @transform_4(%arg0: i32) -> (i32, i32) {
    %c0_i32 = arith.constant 0 : i32
    %c0_i32_0 = arith.constant 0 : i32
    %c0_i32_1 = arith.constant 0 : i32
    return %c0_i32, %c0_i32_0 : i32, i32
  }
  func.func @transform_5(%arg0: i32) -> (i32, i32) {
    %c0_i32 = arith.constant 0 : i32
    %c0_i32_0 = arith.constant 0 : i32
    %c0_i32_1 = arith.constant 0 : i32
    return %c0_i32, %c0_i32_0 : i32, i32
  }
  func.func @transform_6(%arg0: i32) -> (i32, i32) {
    %c0_i32 = arith.constant 0 : i32
    %c0_i32_0 = arith.constant 0 : i32
    %c0_i32_1 = arith.constant 0 : i32
    return %c0_i32, %c0_i32_0 : i32, i32
  }
  func.func @transform_7(%arg0: i32) -> (i32, i32) {
    %c0_i32 = arith.constant 0 : i32
    %c0_i32_0 = arith.constant 0 : i32
    return %c0_i32, %arg0 : i32, i32
  }
}

</mosaic_0001>

<bundles_post_ra>
// kernel: tpu_custom_call.1
= control target key start
LH: loop header
LB: loop body
LE: loop exit
PB: predicated region body
PF: predicated region fallthrough
CT: control target
= control target key end

     0   :  { %s784_s0 = inlined_call_operand.vmem [shape: f32[4,256], index: 0, kind: input, shape index: {}]   ;;  %s785_s1 = inlined_call_operand.vmem [shape: f32[32,4], index: 1, kind: input, shape index: {}]   ;;  %s786_s2 = inlined_call_operand.vmem [shape: f32[32,1], index: 2, kind: input, shape index: {}]   ;;  %s787_s3 = inlined_call_operand.vmem [shape: f32[32,32], index: 3, kind: input, shape index: {}]   ;;  %s788_s4 = inlined_call_operand.vmem [shape: f32[32,1], index: 4, kind: input, shape index: {}]   ;;  %s789_s5 = inlined_call_operand.vmem [shape: f32[32,1], index: 5, kind: input, shape index: {}]   ;;  %s790_s6 = inlined_call_operand.<no memory space> [shape: f32[1,1], index: 6, kind: input, shape index: {}]   ;;  %s791_s7 = inlined_call_operand.hbm [shape: f32[1,256], index: 7, kind: output, shape index: {}]  }
   0x1   :  { %v12_v0 = vstv %s790_s6 }
   0x2   :  { %13 = vst [vmem:[#allocation2] sm:$0x1] %v12_v0 }
   0x3   :  { %v30_v1 = vld [vmem:[%s785_s1] sm:$0xff]  ;;  %v628_v2 = vmov 3   ;;  %v629_v3 = vmov 1   ;;  %v31_v4 = vld [vmem:[%s785_s1 + $0x8] sm:$0xff]  ;;  %v630_v5 = vmov 2  }
   0x4   :  { %557 = vset.pattern.permute.xlu0 %v628_v2  ;;  %553 = vset.pattern.permute.xlu1 %v629_v3 }
   0x5   :  { %199 = vperm.xlu0 %557, %v30_v1   ;;  %99 = vperm.xlu1 %553, %v30_v1  }
   0x9   :  { %558 = vset.pattern.permute.xlu0 %v630_v5  ;;  %103 = vperm.xlu1 %553, %v31_v4  }
   0xa   :  { %14 = vsyncpa [#allocation4], 0  ;;  %149 = vperm.xlu0 %558, %v30_v1   ;;  %v33_v6 = vld [vmem:[%s785_s1 + $0x18] sm:$0xff]  ;;  %v32_v7 = vld [vmem:[%s785_s1 + $0x10] sm:$0xff]  ;;  %v631_v8 = vmov 0   ;;  %v632_v22 = vmov 0.0   ;;  %v64_v28 = vlaneseq }
   0xb   :  { %v34_v9 = vld [vmem:[%s786_s2] sm:$0xff]  ;;  %v37_v10 = vld [vmem:[%s786_s2 + $0x18] sm:$0xff]  ;;  %v39_v11 = vld [vmem:[%s788_s4 + $0x8] sm:$0xff]  ;;  %385 = vmatprep.mubr.f32.mxu0 %v632_v22  ;;  %397 = vmatprep.mubr.f32.mxu1 %v632_v22  ;;  %vm308_vm0 = vcmask 261120  }
   0xc   :  { %v41_v12 = vld [vmem:[%s788_s4 + $0x18] sm:$0xff]  ;;  %v419_v13 = vld [vmem:[%s789_s5 + $0x8] sm:$0xff]  ;;  %v36_v16 = vld [vmem:[%s786_s2 + $0x10] sm:$0xff]  ;;  %v731_v29 = vshrl.u32 %v64_v28, 7  ;;  %vm511_vm1 = vcmp.lt.s32.totalorder %v64_v28, 256 }
   0xd   :  { %554 = vset.pattern.permute.xlu1 %v630_v5  ;;  %v421_v14 = vld [vmem:[%s789_s5 + $0x18] sm:$0xff]  ;;  %v35_v15 = vld [vmem:[%s786_s2 + $0x8] sm:$0xff]  ;;  %v38_v17 = vld [vmem:[%s788_s4] sm:$0xff] }
   0xe   :  { %161 = vperm.xlu0 %558, %v33_v6   ;;  %153 = vperm.xlu1 %554, %v31_v4   ;;  %v40_v18 = vld [vmem:[%s788_s4 + $0x10] sm:$0xff]  ;;  %v418_v19 = vld [vmem:[%s789_s5] sm:$0xff]  ;;  %v736_v32 = vsub.s32 0, %v731_v29  ;;  %v70_v33 = vsub.s32 4, %v731_v29  ;;  %v116_v34 = vsub.s32 1, %v731_v29  ;;  %v120_v35 = vsub.s32 5, %v731_v29 }
   0xf   :  { %v420_v20 = vld [vmem:[%s789_s5 + $0x10] sm:$0xff]  ;;  %v42_v21 = vld [vmem:[#allocation2] sm:$0x1]  ;;  %v166_v42 = vsub.s32 2, %v731_v29  ;;  %v170_v44 = vsub.s32 6, %v731_v29  ;;  %v216_v46 = vsub.s32 3, %v731_v29 }
  0x10   :  { %v29_v36 = vld [vmem:[%s784_s0] sm:$0xff]  ;;  %v220_v48 = vsub.s32 7, %v731_v29 }
  0x11   :  { %v67_v39 = vrot.slane %v29_v36, %v736_v32  ;;  %v71_v40 = vrot.slane %v29_v36, %v70_v33  ;;  %v117_v41 = vrot.slane %v29_v36, %v116_v34  ;;  %v121_v43 = vrot.slane %v29_v36, %v120_v35 }
  0x12   :  { %561 = vset.pattern.permute.xlu0 %v631_v8  ;;  %555 = vset.pattern.permute.xlu1 %v631_v8  ;;  %v167_v51 = vrot.slane %v29_v36, %v166_v42  ;;  %v171_v54 = vrot.slane %v29_v36, %v170_v44  ;;  %v217_v55 = vrot.slane %v29_v36, %v216_v46 }
  0x13   :  { %45 = vperm.xlu0 %561, %v30_v1   ;;  %55 = vperm.xlu1 %555, %v32_v7   ;;  %v77_v47 = vrot.slane %v67_v39, %v736_v32  ;;  %v81_v49 = vrot.slane %v71_v40, %v736_v32  ;;  %v127_v50 = vrot.slane %v117_v41, %v116_v34 }
  0x14   :  { %v131_v53 = vrot.slane %v121_v43, %v116_v34  ;;  %v221_v58 = vrot.slane %v29_v36, %v220_v48  ;;  %v177_v61 = vrot.slane %v167_v51, %v166_v42  ;;  %v181_v63 = vrot.slane %v171_v54, %v166_v42 }
  0x15   :  { %v227_v0 = vrot.slane %v217_v55, %v216_v46 }
  0x17   :  { %50 = vperm.xlu0 %561, %v31_v4   ;;  %556 = vset.pattern.permute.xlu1 %v629_v3 }
  0x18   :  { %107 = vperm.xlu1 %556, %v32_v7  }
  0x1b   :  { %60 = vperm.xlu0 %561, %v33_v6  }
  0x1c   :  { %111 = vperm.xlu1 %556, %v33_v6  }
  0x1f   :  { %250 = vperm.xlu0 %561, %v34_v9  }
  0x20   :  { %559 = vset.pattern.permute.xlu1 %v628_v2 }
  0x21   :  { %203 = vperm.xlu1 %559, %v31_v4   ;;  %v231_v4 = vrot.slane %v221_v58, %v216_v46 }
  0x23   :  { %265 = vperm.xlu0 %561, %v37_v10  }
  0x25   :  { %560 = vset.pattern.permute.xlu1 %v630_v5 }
  0x26   :  { %157 = vperm.xlu1 %560, %v32_v7  }
  0x27   :  { %295 = vperm.xlu0 %561, %v39_v11  }
  0x2a   :  { %562 = vset.pattern.permute.xlu1 %v628_v2 }
  0x2b   :  { %305 = vperm.xlu0 %561, %v41_v12   ;;  %207 = vperm.xlu1 %562, %v32_v7  }
  0x2f   :  { %429 = vperm.xlu0 %561, %v419_v13   ;;  %211 = vperm.xlu1 %562, %v33_v6  }
  0x33   :  { %439 = vperm.xlu0 %561, %v421_v14   ;;  %563 = vset.pattern.permute.xlu1 %v631_v8 }
  0x34   :  { %255 = vperm.xlu1 %563, %v35_v15  }
  0x38   :  { %260 = vperm.xlu1 %563, %v36_v16  }
  0x3c   :  { %290 = vperm.xlu1 %563, %v38_v17  }
  0x40   :  { %300 = vperm.xlu1 %563, %v40_v18  }
  0x44   :  { %424 = vperm.xlu1 %563, %v418_v19  }
  0x48   :  { %434 = vperm.xlu1 %563, %v420_v20  }
  0x4c   :  { %470 = vperm.xlu1 %563, %v42_v21  }
  0x84   :  { %v100_v23 = vpop.permute.xlu1 %99  ;;  %v200_v24 = vpop.permute.xlu0 %199 }
  0x85   :  { %v132_v60 = vmul.f32 %v127_v50, %v100_v23  ;;  %v133_v62 = vmul.f32 %v131_v53, %v100_v23  ;;  %v232_v12 = vmul.f32 %v227_v0, %v200_v24  ;;  %v233_v16 = vmul.f32 %v231_v4, %v200_v24 }
  0x88   :  { %v104_v25 = vpop.permute.xlu1 %103 }
  0x89   :  { %v150_v26 = vpop.permute.xlu0 %149  ;;  %v134_v18 = vmul.f32 %v127_v50, %v104_v25  ;;  %v135_v19 = vmul.f32 %v131_v53, %v104_v25 }
  0x8a   :  { %v182_v1 = vmul.f32 %v177_v61, %v150_v26  ;;  %v183_v5 = vmul.f32 %v181_v63, %v150_v26 }
  0x8d   :  { %v728_v27 = vpop.permute.xlu1 %153  ;;  %v162_v30 = vpop.permute.xlu0 %161 }
  0x8e   :  { %v184_v20 = vmul.f32 %v177_v61, %v728_v27  ;;  %v188_v33 = vmul.f32 %v177_v61, %v162_v30  ;;  %v189_v26 = vmul.f32 %v181_v63, %v162_v30  ;;  %v185_v42 = vmul.f32 %v181_v63, %v728_v27 }
  0x92   :  { %v733_v31 = vpop.permute.xlu1 %55  ;;  %v46_v38 = vpop.permute.xlu0 %45 }
  0x93   :  { %v82_v56 = vmul.f32 %v77_v47, %v46_v38  ;;  %v83_v59 = vmul.f32 %v81_v49, %v46_v38  ;;  %v86_v38 = vmul.f32 %v77_v47, %v733_v31  ;;  %v87_v24 = vmul.f32 %v81_v49, %v733_v31 }
  0x95   :  { %v140_v2 = vadd.f32 %v132_v60, %v82_v56  ;;  %v141_v6 = vadd.f32 %v133_v62, %v83_v59 }
  0x96   :  { %v51_v52 = vpop.permute.xlu0 %50 }
  0x97   :  { %v108_v37 = vpop.permute.xlu1 %107  ;;  %v84_v13 = vmul.f32 %v77_v47, %v51_v52  ;;  %v85_v14 = vmul.f32 %v81_v49, %v51_v52  ;;  %v190_v15 = vadd.f32 %v182_v1, %v140_v2  ;;  %v191_v17 = vadd.f32 %v183_v5, %v141_v6 }
  0x98   :  { %v136_v21 = vmul.f32 %v127_v50, %v108_v37  ;;  %v137_v43 = vmul.f32 %v131_v53, %v108_v37 }
  0x99   :  { %v142_v39 = vadd.f32 %v134_v18, %v84_v13  ;;  %v143_v40 = vadd.f32 %v135_v19, %v85_v14  ;;  %v240_v41 = vadd.f32 %v232_v12, %v190_v15  ;;  %v241_v25 = vadd.f32 %v233_v16, %v191_v17 }
  0x9a   :  { %v61_v3 = vpop.permute.xlu0 %60  ;;  %v144_v44 = vadd.f32 %v136_v21, %v86_v38  ;;  %v145_v59 = vadd.f32 %v137_v43, %v87_v24 }
  0x9b   :  { %v112_v45 = vpop.permute.xlu1 %111  ;;  %v88_v8 = vmul.f32 %v77_v47, %v61_v3  ;;  %v89_v9 = vmul.f32 %v81_v49, %v61_v3  ;;  %v192_v56 = vadd.f32 %v184_v20, %v142_v39  ;;  %v193_v58 = vadd.f32 %v185_v42, %v143_v40 }
  0x9c   :  { %v138_v10 = vmul.f32 %v127_v50, %v112_v45  ;;  %v139_v11 = vmul.f32 %v131_v53, %v112_v45 }
  0x9e   :  { %v146_v34 = vadd.f32 %v138_v10, %v88_v8  ;;  %v147_v35 = vadd.f32 %v139_v11, %v89_v9  ;;  %v251_v36 = vpop.permute.xlu0 %250 }
  0x9f   :  { %v268_v45 = vadd.f32 %v251_v36, %v240_v41  ;;  %v269_v60 = vadd.f32 %v251_v36, %v241_v25 }
  0xa0   :  { %v204_v57 = vpop.permute.xlu1 %203  ;;  %v196_v30 = vadd.f32 %v188_v33, %v146_v34  ;;  %v197_v51 = vadd.f32 %v189_v26, %v147_v35  ;;  %v286_v33 = vld [vmem:[%s787_s3 + $0x10] sm:$0xff]  ;;  %v285_v26 = vld [vmem:[%s787_s3 + $0x8] sm:$0xff]  ;;  %v287_v34 = vld [vmem:[%s787_s3 + $0x18] sm:$0xff] }
  0xa1   :  { %v234_v46 = vmul.f32 %v227_v0, %v204_v57  ;;  %v235_v48 = vmul.f32 %v231_v4, %v204_v57  ;;  %564 = vtanh.f32 %v268_v45 }
  0xa2   :  { %v266_v31 = vpop.permute.xlu0 %265  ;;  %566 = vtanh.f32 %v269_v60 }
  0xa3   :  { %v242_v53 = vadd.f32 %v234_v46, %v192_v56  ;;  %v243_v1 = vadd.f32 %v235_v48, %v193_v58 }
  0xa5   :  { %v158_v7 = vpop.permute.xlu1 %157 }
  0xa6   :  { %v186_v55 = vmul.f32 %v177_v61, %v158_v7  ;;  %v187_v47 = vmul.f32 %v181_v63, %v158_v7  ;;  %v296_v36 = vpop.permute.xlu0 %295 }
  0xa8   :  { %v194_v3 = vadd.f32 %v186_v55, %v144_v44  ;;  %v195_v5 = vadd.f32 %v187_v47, %v145_v59 }
  0xaa   :  { %v208_v23 = vpop.permute.xlu1 %207  ;;  %v306_v44 = vpop.permute.xlu0 %305 }
  0xab   :  { %v236_v37 = vmul.f32 %v227_v0, %v208_v23  ;;  %v237_v49 = vmul.f32 %v231_v4, %v208_v23  ;;  %v284_v23 = vld [vmem:[%s787_s3] sm:$0xff]  ;;  %s634_s3 = smov [#allocation3]  }
  0xac   :  { %s520_s14 = sshll.u32 %s634_s3, 4  ;;  %s521_s14 = int_to_ptr.vmem [resolvable:$true] %s520_s14 }
  0xad   :  { %v244_v63 = vadd.f32 %v236_v37, %v194_v3  ;;  %v245_v7 = vadd.f32 %v237_v49, %v195_v5  ;;  %s604_s15 = scalar_lea.vmem %s521_s14, 32  ;;  %p609_p1 = scmp.lt.s32.totalorder %s521_s14, %s521_s14 }
  0xae   :  { %v212_v50 = vpop.permute.xlu1 %211  ;;  %v430_v59 = vpop.permute.xlu0 %429  ;;  %p605_p0 = scmp.ne.s32.totalorder %s521_s14, %s604_s15  ;;  %p610_p2 = scmp.lt.s32.totalorder %s604_s15, %s604_s15 }
  0xaf   :  { %v238_v52 = vmul.f32 %v227_v0, %v212_v50  ;;  %v239_v54 = vmul.f32 %v231_v4, %v212_v50  ;;  %v565_v4 = vpop.eup %564 }
  0xb0   :  { %v567_v11 = vpop.eup %566  ;;  %p611_p3 = por %p610_p2, %p609_p1 }
  0xb1   :  { %v246_v27 = vadd.f32 %v238_v52, %v196_v30  ;;  %v247_v62 = vadd.f32 %v239_v54, %v197_v51 }
  0xb2   :  { %p612_p4 = pnand %p611_p3, %p605_p0 }
  0xb3   :  { %v274_v57 = vadd.f32 %v266_v31, %v246_v27  ;;  %v256_v2 = vpop.permute.xlu1 %255  ;;  %v275_v61 = vadd.f32 %v266_v31, %v247_v62 }
  0xb4   :  { %v270_v6 = vadd.f32 %v256_v2, %v242_v53  ;;  %v271_v8 = vadd.f32 %v256_v2, %v243_v1 }
  0xb5   :  { %568 = vtanh.f32 %v274_v57 }
  0xb6   :  { %570 = vtanh.f32 %v270_v6  ;;  %v440_v6 = vpop.permute.xlu0 %439 }
  0xb7   :  { %v261_v9 = vpop.permute.xlu1 %260  ;;  %572 = vtanh.f32 %v271_v8 }
  0xb8   :  { %v272_v10 = vadd.f32 %v261_v9, %v244_v63  ;;  %v273_v0 = vadd.f32 %v261_v9, %v245_v7  ;;  %574 = vtanh.f32 %v275_v61 }
  0xba   :  { %576 = vtanh.f32 %v272_v10 }
  0xbb   :  { %578 = vtanh.f32 %v273_v0  ;;  %v291_v35 = vpop.permute.xlu1 %290 }
  0xbf   :  { %v569_v12 = vpop.eup %568  ;;  %v301_v38 = vpop.permute.xlu1 %300 }
  0xc0   :  { %v571_v13 = vpop.eup %570 }
  0xc1   :  { %v573_v14 = vpop.eup %572  ;;  %v536_v15 = vpack.c.bf16 %v571_v13, %v565_v4 }
  0xc2   :  { %v575_v16 = vpop.eup %574  ;;  %v534_v17 = vpack.c.bf16 %v573_v14, %v567_v11 }
  0xc3   :  { %v425_v47 = vpop.permute.xlu1 %424 }
  0xc4   :  { %v577_v18 = vpop.eup %576  ;;  %535 = vmatprep.subr.bf16.mxu0 %v534_v17  ;;  %542 = vmatprep.subr.bf16.mxu1 %v534_v17 }
  0xc5   :  { %v579_v19 = vpop.eup %578  ;;  %537 = vmatpush1.bf16.msra.mxu0 %v536_v15  ;;  %544 = vmatpush1.bf16.msra.mxu1 %v536_v15  ;;  %v540_v21 = vpack.c.bf16 %v569_v12, %v577_v18 }
  0xc6   :  { %v538_v20 = vpack.c.bf16 %v575_v16, %v579_v19 }
  0xc7   :  { %v435_v53 = vpop.permute.xlu1 %434 }
  0xc8   :  { %539 = vmatprep.subr.bf16.mxu0 %v538_v20  ;;  %543 = vmatprep.subr.bf16.mxu1 %v538_v20 }
  0xc9   :  { %541 = vmatpush1.bf16.msra.mxu0 %v540_v21  ;;  %545 = vmatpush1.bf16.msra.mxu1 %v540_v21 }
  0xcb   :  { %v471_v18 = vpop.permute.xlu1 %470 }
  0xcc   :  { %528 = vmatmul.mubr.msk.f32.vlgmr.msra.gmra.mrb[0].mxu0 %vm308_vm0, %v284_v23  ;;  %530 = vmatmul.mubr.msk.f32.vlgmr.msra.gmra.mrb[0].mxu1 %vm308_vm0, %v286_v33  ;;  %v476_v21 = vrot.slane %v471_v18, %v736_v32 }
  0xcd   :  { %391 = vmatprep.mubr.f32.mxu0 %v632_v22  ;;  %403 = vmatprep.mubr.f32.mxu1 %v632_v22 }
  0xd0   :  { %529 = vmatmul.mubr.msk.f32.gmra.mrb[2].mxu0 %vm308_vm0, %v285_v26  ;;  %531 = vmatmul.mubr.msk.f32.gmra.mrb[2].mxu1 %vm308_vm0, %v287_v34 }
 0x19f   :  { %v387_v39 = vpop.f32.mrb[0].mxu0  ;;  %v399_v40 = vpop.f32.mrb[0].mxu1 }
 0x1a0   :  { %v388_v41 = vadd.f32 %v387_v39, %v291_v35  ;;  %v400_v42 = vadd.f32 %v399_v40, %v301_v38  ;;  %v389_v24 = vpop.f32.mrb[1].mxu0  ;;  %v401_v43 = vpop.f32.mrb[1].mxu1 }
 0x1a1   :  { %v390_v22 = vadd.f32 %v389_v24, %v291_v35  ;;  %v402_v25 = vadd.f32 %v401_v43, %v301_v38  ;;  %v633_v24 = vmov 1966171168  }
 0x1a2   :  { %580 = vtanh.f32 %v388_v41  ;;  %v495_v43 = vunpack.c.l.s4 %v633_v24 }
 0x1a3   :  { %582 = vtanh.f32 %v400_v42  ;;  %v393_v45 = vpop.f32.mrb[2].mxu0  ;;  %v405_v46 = vpop.f32.mrb[2].mxu1 }
 0x1a4   :  { %584 = vtanh.f32 %v390_v22  ;;  %v394_v48 = vadd.f32 %v393_v45, %v296_v36  ;;  %v406_v50 = vadd.f32 %v405_v46, %v306_v44  ;;  %v395_v30 = vpop.f32.mrb[3].mxu0  ;;  %v407_v51 = vpop.f32.mrb[3].mxu1  ;;  %v496_v22 = vunpack.c.0.s8 %v495_v43 }
 0x1a5   :  { %586 = vtanh.f32 %v402_v25  ;;  %v396_v52 = vadd.f32 %v395_v30, %v296_v36  ;;  %v408_v54 = vadd.f32 %v407_v51, %v306_v44 }
 0x1a6   :  { %588 = vtanh.f32 %v394_v48  ;;  %v499_v32 = vsub.s32 %v496_v22, %v731_v29 }
 0x1a7   :  { %590 = vtanh.f32 %v406_v50 }
 0x1a8   :  { %592 = vtanh.f32 %v396_v52 }
 0x1a9   :  { %594 = vtanh.f32 %v408_v54 }
 0x1ac   :  { %v581_v55 = vpop.eup %580 }
 0x1ad   :  { %v583_v56 = vpop.eup %582  ;;  %v442_v31 = vmul.f32 %v581_v55, %v425_v47 }
 0x1ae   :  { %v585_v58 = vpop.eup %584  ;;  %v446_v1 = vmul.f32 %v583_v56, %v435_v53 }
 0x1af   :  { %v587_v60 = vpop.eup %586  ;;  %v443_v57 = vmul.f32 %v585_v58, %v425_v47 }
 0x1b0   :  { %v589_v27 = vpop.eup %588  ;;  %v447_v8 = vmul.f32 %v587_v60, %v435_v53 }
 0x1b1   :  { %v591_v62 = vpop.eup %590  ;;  %v444_v37 = vmul.f32 %v589_v27, %v430_v59 }
 0x1b2   :  { %v593_v49 = vpop.eup %592  ;;  %v448_v61 = vmul.f32 %v591_v62, %v440_v6 }
 0x1b3   :  { %v450_v2 = vadd.f32 %v444_v37, %v442_v31  ;;  %v445_v3 = vmul.f32 %v593_v49, %v430_v59  ;;  %v595_v5 = vpop.eup %594 }
 0x1b4   :  { %v449_v10 = vmul.f32 %v595_v5, %v440_v6 }
 0x1b5   :  { %v451_v63 = vadd.f32 %v450_v2, %v446_v1  ;;  %v459_v7 = vadd.f32 %v445_v3, %v443_v57 }
 0x1b7   :  { %v452_v9 = vadd.f32 %v451_v63, %v448_v61  ;;  %v460_v0 = vadd.f32 %v459_v7, %v447_v8 }
 0x1b9   :  { %v453_v4 = vrot.slane %v452_v9, 4  ;;  %v461_v11 = vadd.f32 %v460_v0, %v449_v10 }
 0x1bb   :  { %v454_v12 = vadd.f32 %v453_v4, %v452_v9  ;;  %v462_v13 = vrot.slane %v461_v11, 4 }
 0x1bd   :  { %v455_v14 = vrot.slane %v454_v12, 2  ;;  %v463_v15 = vadd.f32 %v462_v13, %v461_v11 }
 0x1bf   :  { %v456_v16 = vadd.f32 %v455_v14, %v454_v12  ;;  %v464_v17 = vrot.slane %v463_v15, 2 }
 0x1c1   :  { %v457_v19 = vrot.slane %v456_v16, 1  ;;  %v465_v20 = vadd.f32 %v464_v17, %v463_v15 }
 0x1c3   :  { %v458_v23 = vadd.f32 %v457_v19, %v456_v16  ;;  %v466_v33 = vrot.slane %v465_v20, 1 }
 0x1c5   :  { %v477_v26 = vadd.f32 %v476_v21, %v458_v23  ;;  %v467_v34 = vadd.f32 %v466_v33, %v465_v20 }
 0x1c7   :  { %v478_v35 = vadd.f32 %v476_v21, %v467_v34  ;;  %v532_v36 = vmul.f32 -1.442695, %v477_v26 }
 0x1c9   :  { %596 = vpow2.f32 %v532_v36  ;;  %v533_v38 = vmul.f32 -1.442695, %v478_v35 }
 0x1cb   :  { %598 = vpow2.f32 %v533_v38 }
 0x1d3   :  { %v597_v39 = vpop.eup %596 }
 0x1d4   :  { %v485_v40 = vadd.f32 1.0, %v597_v39 }
 0x1d5   :  { %v599_v41 = vpop.eup %598 }
 0x1d6   :  { %v486_v42 = vadd.f32 1.0, %v599_v41  ;;  %600 = vrcp.f32 %v485_v40 }
 0x1d8   :  { %602 = vrcp.f32 %v486_v42 }
 0x1e0   :  { %v601_v25 = vpop.eup %600 }
 0x1e2   :  { %v603_v44 = vpop.eup %602 }
 0x1e3   :  { %v493_v45 = vcombine.low %v601_v25, %v603_v44 }
 0x1e5   :  { %v500_v46 = vrot.slane %v493_v45, %v499_v32 }
 0x1e7   :  { %v507_v48 = vrot.slane %v500_v46, %v499_v32 }
 0x1e9   :  { %513 = vst.msk [vmem:[#allocation3] sm:$0x3] %vm511_vm1, %v507_v48 }
 0x1ea   :  { %615 = shalt.err (!%p612_p4)
}
 0x1eb   :  { %s616_s18 = scalar_lea.hbm %s791_s7, 32 }
 0x1ec   :  { %p617_p5 = scmp.ne.s32.totalorder %s791_s7, %s616_s18  ;;  %p620_p6 = scmp.lt.u32.totalorder %s616_s18, %s791_s7 }
 0x1ee   :  { %p622_p7 = pnand %p620_p6, %p617_p5 }
 0x1f0   :  { %625 = shalt.err (!%p622_p7)
}
 0x1f1   :  { %523 = dma.vmem_to_hbm [thread:$0]  %s521_s14, 32, %s791_s7, [#allocation4]  }
 0x1f2   :  { %626 = dma.done.wait [#allocation4], 32  }
 0x1f3   :  { %627 = vsyncadd [#allocation4], 4294967264 }
 0x1f4   :  { %527 = vsyncpa [#allocation4], 1 }

</bundles_post_ra>
